<compile_context>
chip_gen: v6e
topology: v6e:2x2x1
jax: 0.10.0
libtpu: 0.0.40
codegen_flags: <defaults>
</compile_context>

<pallas_src>
import jax
import jax.numpy as jnp
from jax.experimental import pallas as pl
from jax.experimental.pallas import tpu as pltpu


def _round_up(v, m):
    return (v + m - 1) // m * m


def _vmem_limit_bytes():
    """Scoped VMEM budget sized to the chip (v7x: 64 MiB/TC, v5e/v6e: 128 MiB)."""
    try:
        phys = pltpu.get_tpu_info().vmem_capacity_bytes
        return int(min(96 * 1024 * 1024, phys * 3 // 4))
    except Exception:  # info query unavailable -> conservative default
        return 48 * 1024 * 1024


def _choose_imgs_per_tile(batch, n_patches, k_dim, e_pad, out_itemsize,
                          vmem_budget, target_rows=1024):
    """Images per grid step: whole images only, >= 2 grid steps whenever the
    batch allows (pipelining + second TensorCore), bounded by a ~1024-row
    target and the VMEM budget."""
    best = 1
    for imgs in range(1, batch + 1):
        if batch % imgs:
            continue
        if batch >= 2 and batch // imgs < 2:
            continue                      # never collapse the grid to (1,)
        if imgs > 1 and imgs * n_patches > target_rows:
            continue
        # double-buffered streamed blocks + (double-buffered) invariants
        vmem = 2 * imgs * (n_patches * k_dim * 2                       # patches bf16
                           + (n_patches + 1) * e_pad * out_itemsize)   # out block
        vmem += 2 * (k_dim * e_pad * 2 + (n_patches + 2) * e_pad * 4)  # W + posb + cls
        if vmem > vmem_budget:
            continue
        best = imgs
    return best


def _patch_embed_kernel(patches_ref, w_ref, posb_ref, cls_ref, out_ref):
    # patches_ref: (imgs, N, K)       bf16 -- flattened patches of `imgs` images
    # w_ref:       (K, E_pad)         bf16 -- flattened conv weight (grid-invariant)
    # posb_ref:    (N, E_pad)         f32  -- positions[1:] + conv bias (grid-invariant)
    # cls_ref:     (1, E_pad)         f32  -- cls_token + positions[0] (grid-invariant)
    # out_ref:     (imgs, N+1, E_pad) out_dtype
    imgs, n_patches, _ = patches_ref.shape
    w = w_ref[...]
    posb = posb_ref[...]
    cls_row = cls_ref[...].astype(out_ref.dtype)
    for i in range(imgs):                       # static unroll, imgs is small
        proj = jnp.dot(patches_ref[i], w, preferred_element_type=jnp.float32)
        out_ref[i, pl.ds(0, 1), :] = cls_row
        out_ref[i, pl.ds(1, n_patches), :] = (proj + posb).astype(out_ref.dtype)


def patch_embedding(x, conv_w, conv_b, cls_token, positions, patch_size,
                    out_dtype=jnp.bfloat16):
    """x: (B, C, H, W) float32 (NCHW).  Returns (B, N+1, E) in `out_dtype`.

    Streamed operands are bf16 and the output defaults to bf16 (f32 MXU
    accumulation); pass out_dtype=jnp.float32 if f32 parity is required.
    """
    B, C, H, W = x.shape
    P = patch_size
    E = conv_w.shape[0]
    nh, nw = H // P, W // P
    N = nh * nw
    K = C * P * P

    # ---- glue (XLA): im2col with the bf16 cast BEFORE the transpose so the
    # convert fuses into the transpose copy (materialized buffer is bf16).
    # TODO(synk): fuse this patch extraction into the kernel to remove the pass.
    patches = x.astype(jnp.bfloat16).reshape(B, C, nh, P, nw, P)
    patches = patches.transpose(0, 2, 4, 1, 3, 5).reshape(B, N, K)  # (b, h, w) rows

    # Lane-dense embedding dim: pad E up to a multiple of 128 (demo E=32).
    E_pad = _round_up(E, 128)

    w_mat = conv_w.reshape(E, K).T.astype(jnp.bfloat16)       # (K, E), (c,kh,kw) order
    posb = positions[1:, :] + conv_b[None, :]                 # (N, E) f32
    cls_row = cls_token.reshape(1, E) + positions[0:1, :]     # (1, E) f32
    if E_pad != E:
        w_mat = jnp.pad(w_mat, ((0, 0), (0, E_pad - E)))
        posb = jnp.pad(posb, ((0, 0), (0, E_pad - E)))
        cls_row = jnp.pad(cls_row, ((0, 0), (0, E_pad - E)))

    vmem_limit = _vmem_limit_bytes()
    out_itemsize = jnp.dtype(out_dtype).itemsize
    imgs = _choose_imgs_per_tile(B, N, K, E_pad, out_itemsize,
                                 vmem_budget=int(vmem_limit * 0.75))
    grid = (B // imgs,)

    out = pl.pallas_call(
        _patch_embed_kernel,
        out_shape=jax.ShapeDtypeStruct((B, N + 1, E_pad), out_dtype),
        grid_spec=pltpu.PrefetchScalarGridSpec(
            num_scalar_prefetch=0,
            grid=grid,
            in_specs=[
                pl.BlockSpec((imgs, N, K), lambda t: (t, 0, 0)),
                # Grid-invariant blocks (constant index maps -> no re-DMA).
                # TODO(synk): pipeline_mode=pl.Buffered(1) would halve their
                # VMEM; left at the default double-buffering for compile safety.
                pl.BlockSpec((K, E_pad), lambda t: (0, 0)),
                pl.BlockSpec((N, E_pad), lambda t: (0, 0)),
                pl.BlockSpec((1, E_pad), lambda t: (0, 0)),
            ],
            out_specs=pl.BlockSpec((imgs, N + 1, E_pad), lambda t: (t, 0, 0)),
        ),
        compiler_params=pltpu.CompilerParams(
            dimension_semantics=("parallel",),
            vmem_limit_bytes=vmem_limit,
        ),
    )(patches, w_mat, posb, cls_row)

    if E_pad != E:
        out = out[:, :, :E]     # no-op for E already 128-aligned (e.g. ViT-B 768)
    return out


def reference(x, conv_w, conv_b, cls_token, positions, patch_size):
    """Pure-JAX f32 reference mirroring the PyTorch forward."""
    B, C, H, W = x.shape
    P = patch_size
    E = conv_w.shape[0]
    nh, nw = H // P, W // P
    N = nh * nw
    K = C * P * P
    patches = x.reshape(B, C, nh, P, nw, P).transpose(0, 2, 4, 1, 3, 5).reshape(B, N, K)
    proj = patches @ conv_w.reshape(E, K).T + conv_b[None, None, :]   # (B, N, E)
    cls = jnp.broadcast_to(cls_token.reshape(1, 1, E), (B, 1, E))
    return jnp.concatenate([cls, proj], axis=1) + positions[None, :, :]


if __name__ == "__main__":
    # Small shapes consistent with the module: B=2, C=4, img=16, patch=8, E=32.
    B, C, IMG, P, E = 2, 4, 16, 8, 32
    N = (IMG // P) ** 2

    key = jax.random.PRNGKey(0)
    kx, kw, kb, kc, kp = jax.random.split(key, 5)
    x = jax.random.normal(kx, (B, C, IMG, IMG), dtype=jnp.float32)
    conv_w = jax.random.normal(kw, (E, C, P, P), dtype=jnp.float32) * 0.02
    conv_b = jax.random.normal(kb, (E,), dtype=jnp.float32) * 0.02
    cls_token = jax.random.normal(kc, (1, 1, E), dtype=jnp.float32)
    positions = jax.random.normal(kp, (N + 1, E), dtype=jnp.float32)

    out = patch_embedding(x, conv_w, conv_b, cls_token, positions, P)
    out = jax.block_until_ready(out)

    ref = reference(x, conv_w, conv_b, cls_token, positions, P)
    assert out.shape == (B, N + 1, E), out.shape
    # bf16 streamed operands and bf16 output with f32 accumulation.
    assert jnp.allclose(out.astype(jnp.float32), ref, atol=3e-2, rtol=3e-2), \
        "mismatch vs reference"
    print("KERNEL_OK")
</pallas_src>

<mosaic_0001>
module attributes {stable_mosaic.version = 11 : i64} {
  func.func @_patch_embed_kernel(%arg0: i32, %arg1: memref<1x4x256xbf16, #tpu.memory_space<vmem>>, %arg2: memref<256x128xbf16, #tpu.memory_space<vmem>>, %arg3: memref<4x128xf32, #tpu.memory_space<vmem>>, %arg4: memref<1x128xf32, #tpu.memory_space<vmem>>, %arg5: memref<1x5x128xbf16, #tpu.memory_space<vmem>>) attributes {dimension_semantics = [#tpu.dimension_semantics<parallel>], iteration_bounds = array<i64: 2>, scalar_prefetch = 0 : i64, scratch_operands = 0 : i64, tpu.core_type = #tpu.core_type<tc>, window_params = [{transform_indices = @transform_0, window_bounds = array<i64: 1, 4, 256>}, {pipeline_mode = #tpu.pipeline_mode<synchronous>, transform_indices = @transform_1, window_bounds = array<i64: 256, 128>}, {pipeline_mode = #tpu.pipeline_mode<synchronous>, transform_indices = @transform_2, window_bounds = array<i64: 4, 128>}, {pipeline_mode = #tpu.pipeline_mode<synchronous>, transform_indices = @transform_3, window_bounds = array<i64: 1, 128>}, {transform_indices = @transform_4, window_bounds = array<i64: 1, 5, 128>}]} {
    %c0 = arith.constant 0 : index
    %c0_0 = arith.constant 0 : index
    %0 = vector.load %arg2[%c0, %c0_0] : memref<256x128xbf16, #tpu.memory_space<vmem>>, vector<256x128xbf16>
    %c0_1 = arith.constant 0 : index
    %c0_2 = arith.constant 0 : index
    %1 = vector.load %arg3[%c0_1, %c0_2] : memref<4x128xf32, #tpu.memory_space<vmem>>, vector<4x128xf32>
    %c0_3 = arith.constant 0 : index
    %c0_4 = arith.constant 0 : index
    %2 = vector.load %arg4[%c0_3, %c0_4] : memref<1x128xf32, #tpu.memory_space<vmem>>, vector<1x128xf32>
    %3 = arith.truncf %2 : vector<1x128xf32> to vector<1x128xbf16>
    %c0_5 = arith.constant 0 : index
    %c0_6 = arith.constant 0 : index
    %c0_7 = arith.constant 0 : index
    %4 = vector.load %arg1[%c0_5, %c0_6, %c0_7] : memref<1x4x256xbf16, #tpu.memory_space<vmem>>, vector<1x4x256xbf16>
    %5 = vector.shape_cast %4 : vector<1x4x256xbf16> to vector<4x256xbf16>
    %cst = arith.constant dense<0.000000e+00> : vector<4x128xf32>
    %6 = tpu.matmul %5, %0, %cst {dimension_numbers = #tpu.dot_dimension_numbers<[1], [0], [0], [1], [0, 0, 1, 1], [], []>} : vector<4x256xbf16>, vector<256x128xbf16>, vector<4x128xf32> -> vector<4x128xf32>
    %c0_8 = arith.constant 0 : index
    %c0_9 = arith.constant 0 : index
    %c0_10 = arith.constant 0 : index
    %7 = vector.load %arg5[%c0_8, %c0_9, %c0_10] : memref<1x5x128xbf16, #tpu.memory_space<vmem>>, vector<1x1x128xbf16>
    %8 = vector.shape_cast %7 : vector<1x1x128xbf16> to vector<1x128xbf16>
    %9 = vector.shape_cast %3 : vector<1x128xbf16> to vector<1x1x128xbf16>
    tpu.vector_store %arg5[%c0_8, %c0_9, %c0_10], %9 {strides = array<i32>} : memref<1x5x128xbf16, #tpu.memory_space<vmem>>, vector<1x1x128xbf16>,
    %10 = arith.addf %6, %1 : vector<4x128xf32>
    %11 = arith.truncf %10 : vector<4x128xf32> to vector<4x128xbf16>
    %c0_11 = arith.constant 0 : index
    %c1 = arith.constant 1 : index
    %c0_12 = arith.constant 0 : index
    %12 = vector.load %arg5[%c0_11, %c1, %c0_12] : memref<1x5x128xbf16, #tpu.memory_space<vmem>>, vector<1x4x128xbf16>
    %13 = vector.shape_cast %12 : vector<1x4x128xbf16> to vector<4x128xbf16>
    %14 = vector.shape_cast %11 : vector<4x128xbf16> to vector<1x4x128xbf16>
    tpu.vector_store %arg5[%c0_11, %c1, %c0_12], %14 {strides = array<i32>} : memref<1x5x128xbf16, #tpu.memory_space<vmem>>, vector<1x4x128xbf16>,
    return
  }
  func.func @transform_0(%arg0: i32) -> (i32, i32, i32) {
    %c0_i32 = arith.constant 0 : i32
    %c0_i32_0 = arith.constant 0 : i32
    %c0_i32_1 = arith.constant 0 : i32
    return %arg0, %c0_i32, %c0_i32_0 : i32, i32, i32
  }
  func.func @transform_1(%arg0: i32) -> (i32, i32) {
    %c0_i32 = arith.constant 0 : i32
    %c0_i32_0 = arith.constant 0 : i32
    %c0_i32_1 = arith.constant 0 : i32
    return %c0_i32, %c0_i32_0 : i32, i32
  }
  func.func @transform_2(%arg0: i32) -> (i32, i32) {
    %c0_i32 = arith.constant 0 : i32
    %c0_i32_0 = arith.constant 0 : i32
    %c0_i32_1 = arith.constant 0 : i32
    return %c0_i32, %c0_i32_0 : i32, i32
  }
  func.func @transform_3(%arg0: i32) -> (i32, i32) {
    %c0_i32 = arith.constant 0 : i32
    %c0_i32_0 = arith.constant 0 : i32
    %c0_i32_1 = arith.constant 0 : i32
    return %c0_i32, %c0_i32_0 : i32, i32
  }
  func.func @transform_4(%arg0: i32) -> (i32, i32, i32) {
    %c0_i32 = arith.constant 0 : i32
    %c0_i32_0 = arith.constant 0 : i32
    %c0_i32_1 = arith.constant 0 : i32
    return %arg0, %c0_i32, %c0_i32_0 : i32, i32, i32
  }
}

</mosaic_0001>

<bundles_post_ra>
// kernel: tpu_custom_call.1
= control target key start
LH: loop header
LB: loop body
LE: loop exit
PB: predicated region body
PF: predicated region fallthrough
CT: control target
= control target key end

     0   :  { %9 = vsyncpa [#allocation3], 0  ;;  %s949_s0 = inlined_call_operand.hbm [shape: bf16[2,4,256], index: 0, kind: input, shape index: {}]   ;;  %s950_s1 = inlined_call_operand.hbm [shape: bf16[256,128], index: 1, kind: input, shape index: {}]   ;;  %s951_s2 = inlined_call_operand.hbm [shape: f32[4,128], index: 2, kind: input, shape index: {}]   ;;  %s952_s3 = inlined_call_operand.vmem [shape: f32[1,128], index: 3, kind: input, shape index: {}]   ;;  %s953_s4 = inlined_call_operand.vmem [shape: bf16[2,5,128], index: 4, kind: output, shape index: {}]  }
   0x1   :  { %11 = vsyncpa [#allocation3 + $0x1], 0 }
   0x2   :  { %12 = vsyncpa [#allocation5], 0  ;;  %s818_s15 = smov 0   ;;  %s820_s16 = smov 0  }
   0x3   :  { %s822_s17 = smov 0   ;;  %s824_s18 = smov 0  }
   0x4 LB: > { %s837_s19 = sadd.s32 4294967295, %s786_s18   ;;  %p38_p0 = scmp.ne.s32.totalorder %s778_s16, %s774_s15  ;;  %s786_s18 = sphi %s824_s18, %s968_s18   ;;  %s782_s17 = sphi %s822_s17, %s967_s17   ;;  %s778_s16 = sphi %s820_s16, %s966_s16   ;;  %s774_s15 = sphi %s818_s15, %s965_s15  }
   0x5   : > { %p954_p1 = scmp.eq.s32.totalorder %s837_s19, 0  ;;  %p534_p2 = scmp.ge.s32.totalorder %s786_s18, 1 }
   0x6   : > { %p138_p3 = scmp.lt.s32.totalorder %s786_s18, 3  ;;  %s788_s22 = smov [#allocation4]  }
   0x7   : > { %p845_p4 = por %p954_p1, %p38_p0  ;;  %s150_s23 = sshll.u32 %s788_s22, 4  ;;  %s151_s23 = int_to_ptr.vmem [resolvable:$true] %s150_s23 }
   0x8   : > { %p849_p5 = pnand %p534_p2, %p138_p3  ;;  %s789_s25 = smov [#allocation6]  }
   0x9   : > { %s957_s20 = scalar_select %p845_p4, 1, 0 }
   0xa   : > { %s958_s21 = scalar_select %p849_p5, 1, 0 }
   0xb   : > { %p600_p6 = pneg %p849_p5  ;;  %s164_s26 = sshll.u32 %s789_s25, 4  ;;  %s165_s26 = int_to_ptr.vmem [resolvable:$true] %s164_s26 }
   0xc   : > { %s679_s27 = scalar_lea.vmem %s151_s23, 2048  ;;  %p687_p12 = scmp.lt.s32.totalorder %s151_s23, %s151_s23 }
   0xd   : > { %p857_p7 = pnand %p600_p6, %p954_p1  ;;  %p680_p9 = scmp.ne.s32.totalorder %s151_s23, %s679_s27 }
   0xe   : > { %p688_p13 = scmp.lt.s32.totalorder %s679_s27, %s679_s27 }
   0xf   : > { %p670_p8 = pneg %p857_p7 }
  0x10   : > { %p689_p0 = por %p688_p13, %p687_p12 }
  0x11   : > { %p682_p10 = pnand %p680_p9, %p670_p8 }
  0x13   : > { %p683_p11 = pneg %p682_p10 }
  0x15   : > { %p690_p2 = pnand %p689_p0, %p683_p11 }
  0x17   : > { %693 = shalt.err (!%p690_p2)
}
  0x18   : > { %s790_s28 = smov 64   ;;  %s791_s29 = smov 4  }
  0x19   : > { %603 = dma.hbm_to_vmem [thread:$0]  (!%p857_p7), %s950_s1, 2048, %s151_s23, [#allocation5], %s790_s28, %s790_s28, %s791_s29  }
  0x1a   : > { %s705_s6 = scalar_lea.vmem %s165_s26, 64  ;;  %p713_p10 = scmp.lt.s32.totalorder %s165_s26, %s165_s26 }
  0x1b   : > { %p706_p3 = scmp.ne.s32.totalorder %s165_s26, %s705_s6  ;;  %p714_p1 = scmp.lt.s32.totalorder %s705_s6, %s705_s6 }
  0x1d   : > { %p708_p6 = pnand %p706_p3, %p670_p8  ;;  %p715_p12 = por %p714_p1, %p713_p10 }
  0x1f   : > { %p709_p9 = pneg %p708_p6 }
  0x21   : > { %p716_p11 = pnand %p715_p12, %p709_p9 }
  0x23   : > { %719 = shalt.err (!%p716_p11)
}
  0x24   : > { %606 = dma.hbm_to_vmem [thread:$0]  (!%p857_p7), %s951_s2, 64, %s165_s26, [#allocation5]  }
  0x25   : > { %s880_s9 = sadd.s32 1, %s786_s18   ;;  %s25_s10 = sadd.s32 1, %s782_s17 }
  0x26   : > { %s22_s11 = ssub.s32 %s786_s18, %s880_s9  ;;  %p32_p1 = scmp.ne.s32.totalorder %s782_s17, %s778_s16 }
  0x27   : > { %p23_p8 = scmp.eq.s32.totalorder %s22_s11, 0  ;;  %p33_p13 = scmp.eq.s32.totalorder %s786_s18, 0 }
  0x28   : > { %p613_p0 = scmp.lt.s32.totalorder %s786_s18, 2  ;;  %s178_s12 = sand.u32 1, %s782_s17  }
  0x29   : > { %s891_s13 = scalar_select %p23_p8, %s782_s17, %s25_s10  }
  0x2a   : > { %p34_p2 = por %p33_p13, %p32_p1  ;;  %s538_s14 = sshll.u32 %s178_s12, 2 }
  0x2b   : > { %s566_s15 = sshll.u32 %s786_s18, 6  ;;  %s182_s25 = scalar_lea.vmem [#allocation2], %s538_s14 }
  0x2c   : > { %s897_s24 = scalar_lea.hbm %s949_s0, %s566_s15  ;;  %s190_s26 = sshll.u32 %s182_s25, 4  ;;  %s191_s26 = int_to_ptr.vmem [resolvable:$true] %s190_s26 }
  0x2d   : > { %p899_p7 = pnand %p613_p0, %p34_p2  ;;  %s179_s28 = scalar_lea.sflag [#allocation3], %s178_s12 }
  0x2e   : > { %s720_s29 = scalar_lea.hbm %s897_s24, 64  ;;  %s725_s5 = scalar_lea.hbm %s949_s0, 128 }
  0x2f   : > { %p721_p3 = scmp.ne.s32.totalorder %s897_s24, %s720_s29  ;;  %p722_p6 = pneg %p899_p7 }
  0x30   : > { %p726_p12 = scmp.lt.s32.totalorder %s897_s24, %s949_s0  ;;  %p727_p11 = scmp.lt.s32.totalorder %s725_s5, %s720_s29 }
  0x31   : > { %p723_p9 = pnand %p722_p6, %p721_p3 }
  0x32   : > { %p728_p1 = por %p727_p11, %p726_p12 }
  0x33   : > { %p724_p10 = pneg %p723_p9 }
  0x35   : > { %p729_p8 = pnand %p728_p1, %p724_p10 }
  0x37   : > { %732 = shalt.err (!%p729_p8)
}
  0x38   : > { %s733_s8 = scalar_lea.vmem %s191_s26, 64  ;;  %s792_s10 = smov [#allocation2]  }
  0x39   : > { %p734_p13 = scmp.ne.s32.totalorder %s191_s26, %s733_s8  ;;  %s738_s11 = sshll.u32 %s792_s10, 4  ;;  %s739_s11 = int_to_ptr.vmem [resolvable:$false] %s738_s11 }
  0x3a   : > { %s740_s12 = scalar_lea.vmem %s739_s11, 128  ;;  %p741_p3 = scmp.lt.s32.totalorder %s191_s26, %s739_s11 }
  0x3b   : > { %p736_p0 = pnand %p734_p13, %p722_p6  ;;  %p742_p9 = scmp.lt.s32.totalorder %s740_s12, %s733_s8 }
  0x3d   : > { %p737_p2 = pneg %p736_p0  ;;  %p743_p4 = por %p742_p9, %p741_p3 }
  0x3f   : > { %p744_p5 = pnand %p743_p4, %p737_p2 }
  0x41   : > { %747 = shalt.err (!%p744_p5)
}
  0x42   : > { %610 = dma.hbm_to_vmem [thread:$0]  (!%p899_p7), %s897_s24, 64, %s191_s26, %s179_s28  }
  0x43   : > { %p961_p10 = scmp.ne.s32.totalorder %s958_s21, 0 }
  0x44   : > { %s201_s14 = sand.u32 (!%p961_p10), 1, %s778_s16   ;;  %p962_p6 = scmp.ne.s32.totalorder (!%p961_p10), %s957_s20, 0 }
  0x45   : > { %199 = sbr.rel (%p961_p10) target bundleno = 320 (0x140), region = 36  ;;  %s542_s15 = sshll.u32 (!%p961_p10), %s201_s14, 2 }
  0x46   : > { %s202_s22 = scalar_lea.sflag (!%p961_p10), [#allocation3], %s201_s14  ;;  %s205_s23 = scalar_lea.vmem (!%p961_p10), [#allocation2], %s542_s15 }
  0x4a   : > { %765 = dma.done.wait (%p962_p6), %s202_s22, 64  }
  0x4b   : > { %767 = vsyncadd (%p962_p6), %s202_s22, 4294967232  ;;  %p963_p4 = scmp.eq.s32.totalorder %s837_s19, 0 }
  0x4d   : > { %769 = dma.done.wait (%p963_p4), [#allocation5], 2112   ;;  %p964_p5 = pmov %p963_p4 }
  0x4e   : > { %v652_v0 = vld [vmem:[#allocation4 + $0x78] sm:$0xff]   ;;  %v654_v2 = vld [vmem:[#allocation4 + $0x70] sm:$0xff]   ;;  %v656_v4 = vld [vmem:[#allocation4 + $0x68] sm:$0xff]   ;;  %p237_p7 = scmp.lt.s32.totalorder %s837_s19, 1  ;;  %vm278_vm0 = vcmask 1040384   ;;  %vm443_vm3 = vcmask 1042432  }
  0x4f   : > { %771 = vsyncadd (%p964_p5), [#allocation5], 4294965184  ;;  %v653_v1 = vld [vmem:[#allocation4 + $0x38] sm:$0xff]   ;;  %568 = vmatprep.subr.bf16.mxu0 %v652_v0  ;;  %v655_v3 = vld [vmem:[#allocation4 + $0x30] sm:$0xff]   ;;  %vm279_vm1 = vsmask.f32 256 }
  0x50   : > { %569 = vmatpush3.bf16.msra.mxu0 %v653_v1  ;;  %v657_v5 = vld [vmem:[#allocation4 + $0x28] sm:$0xff]   ;;  %v658_v6 = vld [vmem:[#allocation4 + $0x60] sm:$0xff]   ;;  %v660_v8 = vld [vmem:[#allocation4 + $0x58] sm:$0xff]   ;;  %s970_s19 = smov (!%p237_p7, %s837_s19), 1  ;;  %vm444_vm4 = vsmask.f32 2306 }
  0x51   : > { %570 = vmatprep.subr.bf16.mxu0 %v654_v2  ;;  %v659_v7 = vld [vmem:[#allocation4 + $0x20] sm:$0xff]   ;;  %v661_v9 = vld [vmem:[#allocation4 + $0x18] sm:$0xff]   ;;  %v662_v10 = vld [vmem:[#allocation4 + $0x50] sm:$0xff]   ;;  %s545_s24 = sshll.u32 %s970_s19, 2 }
  0x52   : > { %v546_v11 = vld.sshfl [vmem:[%s205_s23] sm:$0x33 pattern:$0x76325410]  ;;  %v663_v13 = vld [vmem:[#allocation4 + $0x10] sm:$0xff]   ;;  %v664_v14 = vld [vmem:[#allocation4 + $0x48] sm:$0xff]   ;;  %s240_s27 = scalar_lea.vmem %s953_s4, %s545_s24 }
  0x53   : > { %v292_v12 = vcombine.high %v546_v11, %v546_v11  ;;  %v665_v15 = vld [vmem:[#allocation4 + $0x8] sm:$0xff]   ;;  %v666_v16 = vld [vmem:[#allocation4 + $0x40] sm:$0xff]   ;;  %v275_v18 = vld [vmem:[%s952_s3] sm:$0x1] }
  0x54   : > { %571 = vmatpush3.bf16.msra.mxu0 %v655_v3  ;;  %v667_v17 = vld [vmem:[#allocation4] sm:$0xff]   ;;  %v276_v19 = vpack.c.bf16 %v275_v18, %v275_v18  ;;  %vm280_vm2 = vmand %vm278_vm0, %vm279_vm1  ;;  %v281_v20 = vld [vmem:[%s240_s27] sm:$0x1] }
  0x55   : > { %572 = vmatprep.subr.bf16.mxu0 %v656_v4  ;;  %423 = vmatprep.mubr.bf16.mxu0 %v292_v12  ;;  %v274_v23 = vld [vmem:[#allocation6] sm:$0xf]  ;;  %vm445_vm5 = vmand %vm443_vm3, %vm444_vm4 }
  0x56   : > { %v282_v21 = vsel %vm280_vm2, %v276_v19, %v281_v20 }
  0x57   : > { %283 = vst [vmem:[%s240_s27] sm:$0x1] %v282_v21 }
  0x58   : > { %573 = vmatpush3.bf16.msra.mxu0 %v657_v5 }
  0x59   : > { %574 = vmatprep.subr.bf16.mxu0 %v658_v6 }
  0x5c   : > { %575 = vmatpush3.bf16.msra.mxu0 %v659_v7 }
  0x5d   : > { %576 = vmatprep.subr.bf16.mxu0 %v660_v8 }
  0x5e   : > { %v446_v33 = vld [vmem:[%s240_s27] sm:$0x7] }
  0x60   : > { %577 = vmatpush3.bf16.msra.mxu0 %v661_v9 }
  0x61   : > { %578 = vmatprep.subr.bf16.mxu0 %v662_v10 }
  0x64   : > { %579 = vmatpush3.bf16.msra.mxu0 %v663_v13 }
  0x65   : > { %580 = vmatprep.subr.bf16.mxu0 %v664_v14 }
  0x68   : > { %581 = vmatpush3.bf16.msra.mxu0 %v665_v15 }
  0x69   : > { %582 = vmatprep.subr.bf16.mxu0 %v666_v16 }
  0x6c   : > { %583 = vmatpush3.bf16.msra.mxu0 %v667_v17 }
  0x6f   : > { %424 = vmatmul.mubr.bf16.vlgmr.msra.gmra.mxu0 %v546_v11 }
 0x12f   : > { %v584_v22 = vpop.f32.mrf.mxu0 }
 0x131   : > { %v585_v24 = vpop.f32.mrf.mxu0 }
 0x132   : > { %v586_v25 = vadd.f32 %v585_v24, %v584_v22 }
 0x133   : > { %v587_v26 = vpop.f32.mrf.mxu0 }
 0x134   : > { %v426_v27 = vadd.f32 %v586_v25, %v274_v23 }
 0x135   : > { %v588_v28 = vpop.f32.mrf.mxu0 }
 0x136   : > { %v567_v29 = vpack.c.bf16 %v426_v27, %v426_v27 }
 0x138   : > { %v436_v30 = vshrl.u32 %v567_v29, 16  ;;  %v439_v32 = vshll.u32 %v567_v29, 16 }
 0x13a   : > { %v438_v31 = vrot.slane %v436_v30, 7 }
 0x13c   : > { %v441_v34 = vor.u32 %v439_v32, %v438_v31 }
 0x13e   : > { %v447_v35 = vsel %vm445_vm5, %v441_v34, %v446_v33 }
 0x13f   : > { %448 = vst [vmem:[%s240_s27] sm:$0x7] %v447_v35 }
 0x140 PF: > { %p15_p12 = scmp.ge.s32.totalorder %s880_s9, 4   ;;  %s965_s15 = smov %s778_s16 }
 0x141   : > { %s966_s16 = smov %s782_s17  ;;  %s967_s17 = smov %s891_s13 }
 0x142   : > { %s968_s18 = smov %s880_s9  ;;  %17 = sbr.rel (!%p15_p12) target bundleno = 4 (0x4), region = 84 }
 0x147   :  { %468 = vsyncpa [#allocation3], 1 }
 0x148   :  { %470 = vsyncpa [#allocation3 + $0x1], 1 }
 0x149   :  { %471 = vsyncpa [#allocation5], 1 }

</bundles_post_ra>
